<compile_context>
chip_gen: v7x
topology: tpu7x:2x2x1
jax: 0.10.0
libtpu: 0.0.40
codegen_flags: <defaults>
</compile_context>

<pallas_src>
import functools

import jax
import jax.numpy as jnp
from jax import lax
from jax.experimental import pallas as pl
from jax.experimental.pallas import tpu as pltpu

LRELU_SLOPE = 0.1
_DEFAULT_VMEM_LIMIT = 48 * 1024 * 1024


def _cdiv(a, b):
    return -(-a // b)


def _min_halo(compute_dtype):
    return 8 if jnp.dtype(compute_dtype).itemsize >= 4 else 16


def _pick_halo(need, qt, min_h=8):
    """Smallest power-of-two halo >= need that divides the time tile."""
    h = min_h
    while h < max(need, 1):
        h *= 2
    if h <= qt and qt % h == 0:
        return h
    return None


def _x_halo_specs(qt, hb, cin, R, NB):
    """prev-tail / main / next-head views of the (N, L, Cin) activation."""
    return [
        pl.BlockSpec((1, hb, cin),
                     lambda n, t: (n, jnp.maximum(t * R - 1, 0), 0)),
        pl.BlockSpec((1, qt, cin), lambda n, t: (n, t, 0)),
        pl.BlockSpec((1, hb, cin),
                     lambda n, t: (n, jnp.minimum((t + 1) * R, NB - 1), 0)),
    ]


# ----------------------------------------------------------------------------
# Single-conv kernel (regular, dilated, and packed polyphase transposed conv).
# Grid = (batch, time-tile).
# ----------------------------------------------------------------------------
def _conv_kernel(*refs, n_res, offsets, span, cin, use_taps, pre_slope,
                 pre_scale, post_tanh, mask_rows, n_in_main):
    xl_ref, xc_ref, xr_ref, w_ref, b_ref = refs[:5]
    res_refs = refs[5:5 + n_res]
    o_ref = refs[5 + n_res]
    t = pl.program_id(1)

    # Halo views (clamped index_maps); mask at the boundaries -> conv padding.
    left = xl_ref[0]
    right = xr_ref[0]
    left = jnp.where(t == 0, jnp.zeros_like(left), left)
    right = jnp.where(t + 1 >= n_in_main, jnp.zeros_like(right), right)
    x = jnp.concatenate([left, xc_ref[0], right], axis=0)

    # Fused pre-ops (xs/num_kernels scale, leaky-relu); exact on zero padding.
    if pre_scale is not None:
        x = x * jnp.asarray(pre_scale, x.dtype)
    if pre_slope is not None:
        x = jnp.where(x >= 0, x, jnp.asarray(pre_slope, x.dtype) * x)

    cout = o_ref.shape[-1]
    if use_taps:
        # K accumulating matmuls -> no (qt, K*Cin) im2col slab in VMEM.
        acc = jnp.zeros((span, cout), jnp.float32)
        for i, o in enumerate(offsets):
            acc = acc + jnp.dot(x[o:o + span, :],
                                w_ref[i * cin:(i + 1) * cin, :],
                                preferred_element_type=jnp.float32)
    else:
        if len(offsets) == 1:
            cols = x[offsets[0]:offsets[0] + span, :]
        else:
            cols = jnp.concatenate([x[o:o + span, :] for o in offsets], axis=1)
        acc = jnp.dot(cols, w_ref[...], preferred_element_type=jnp.float32)

    acc = acc + b_ref[...]
    for r_ref in res_refs:                       # fused residual / xs adds
        acc = acc + r_ref[0].astype(jnp.float32)
    if post_tanh:
        acc = jnp.tanh(acc)
    o_ref[0] = acc.astype(o_ref.dtype)

    # Tail zeroing only touches the last tile (off the common path).
    if mask_rows is not None:
        @pl.when(t == pl.num_programs(1) - 1)
        def _():
            rows = t * span + lax.broadcasted_iota(jnp.int32, (span, cout), 0)
            o_ref[0] = jnp.where(rows < mask_rows, o_ref[0],
                                 jnp.zeros((span, cout), o_ref.dtype))


def _run_conv(x, w2, b2, residuals, *, qt, hb, offsets, n_out_tiles,
              mask_rows, pre_slope, pre_scale, post_tanh, compute_dtype,
              vmem_limit):
    """x: (N, L_in, Cin) with L_in % qt == 0.  Output (N, n_out_tiles*qt, Cw)."""
    N, L_in, Cin = x.shape
    Dc, cout_w = w2.shape
    assert L_in % qt == 0 and qt % hb == 0 and L_in % hb == 0
    R = qt // hb
    NB = L_in // hb
    n_in_main = L_in // qt
    use_taps = (Cin % 8 == 0) and (Dc == Cin * len(offsets))

    x = x.astype(compute_dtype)
    w2 = w2.astype(compute_dtype)
    b2 = b2.astype(jnp.float32).reshape(1, cout_w)
    residuals = tuple(r.astype(compute_dtype) for r in residuals)

    kernel = functools.partial(
        _conv_kernel, n_res=len(residuals), offsets=tuple(offsets), span=qt,
        cin=Cin, use_taps=use_taps, pre_slope=pre_slope, pre_scale=pre_scale,
        post_tanh=post_tanh, mask_rows=mask_rows, n_in_main=n_in_main)

    in_specs = _x_halo_specs(qt, hb, Cin, R, NB) + [
        pl.BlockSpec((Dc, cout_w), lambda n, t: (0, 0)),
        pl.BlockSpec((1, cout_w), lambda n, t: (0, 0)),
    ] + [pl.BlockSpec((1, qt, cout_w), lambda n, t: (n, t, 0))
         for _ in residuals]

    return pl.pallas_call(
        kernel,
        out_shape=jax.ShapeDtypeStruct((N, n_out_tiles * qt, cout_w),
                                       compute_dtype),
        grid=(N, n_out_tiles),
        in_specs=in_specs,
        out_specs=pl.BlockSpec((1, qt, cout_w), lambda n, t: (n, t, 0)),
        compiler_params=pltpu.CompilerParams(
            dimension_semantics=("parallel", "parallel"),
            vmem_limit_bytes=vmem_limit),
    )(x, x, x, w2, b2, *residuals)


# ----------------------------------------------------------------------------
# Fused residual pair kernel: two convs + residual(s) in one pallas_call.
#   mid_residual=False (ResBlock1 pair): out = c2(lrelu(c1(lrelu(x)))) + x [+xs]
#   mid_residual=True  (ResBlock2 pair): x1 = c1(lrelu(x)) + x
#                                        out = c2(lrelu(x1)) + x1 [+xs]
# The intermediate stays in VMEM; the halo covers both receptive fields.
# ----------------------------------------------------------------------------
def _fused_pair_kernel(*refs, n_res, cin, cmid, offsets1, offsets2, span,
                       p2_left, span_mid, t_valid, needs_mask, mid_residual,
                       n_in_main, slope):
    xl_ref, xc_ref, xr_ref, w1_ref, b1_ref, w2_ref, b2_ref = refs[:7]
    res_refs = refs[7:7 + n_res]
    o_ref = refs[7 + n_res]
    t = pl.program_id(1)

    left = xl_ref[0]
    right = xr_ref[0]
    left = jnp.where(t == 0, jnp.zeros_like(left), left)
    right = jnp.where(t + 1 >= n_in_main, jnp.zeros_like(right), right)
    x_full = jnp.concatenate([left, xc_ref[0], right], axis=0)
    hb = (x_full.shape[0] - span) // 2

    neg = jnp.asarray(slope, x_full.dtype)
    a = jnp.where(x_full >= 0, x_full, neg * x_full)

    # conv1 on the extended range (span + c2's receptive-field slack).
    mid = jnp.zeros((span_mid, cmid), jnp.float32)
    for i, o in enumerate(offsets1):
        mid = mid + jnp.dot(a[o:o + span_mid, :],
                            w1_ref[i * cin:(i + 1) * cin, :],
                            preferred_element_type=jnp.float32)
    mid = mid + b1_ref[...]
    if mid_residual:
        mid = mid + x_full[hb - p2_left:hb - p2_left + span_mid,
                           :].astype(jnp.float32)

    # Rows outside [0, t_valid) feed conv2 as zeros (conv2's zero padding).
    g = t * span - p2_left + lax.broadcasted_iota(jnp.int32, mid.shape, 0)
    mid = jnp.where((g >= 0) & (g < t_valid), mid, 0.0)

    a2 = jnp.where(mid >= 0, mid, jnp.float32(slope) * mid)
    a2 = a2.astype(x_full.dtype)

    cout = o_ref.shape[-1]
    acc = jnp.zeros((span, cout), jnp.float32)
    for i, o in enumerate(offsets2):
        acc = acc + jnp.dot(a2[o:o + span, :],
                            w2_ref[i * cmid:(i + 1) * cmid, :],
                            preferred_element_type=jnp.float32)
    acc = acc + b2_ref[...]
    if mid_residual:
        acc = acc + mid[p2_left:p2_left + span, :]
    else:
        acc = acc + xc_ref[0].astype(jnp.float32)
    for r_ref in res_refs:
        acc = acc + r_ref[0].astype(jnp.float32)
    o_ref[0] = acc.astype(o_ref.dtype)

    if needs_mask:
        @pl.when(t == pl.num_programs(1) - 1)
        def _():
            rows = t * span + lax.broadcasted_iota(jnp.int32, (span, cout), 0)
            o_ref[0] = jnp.where(rows < t_valid, o_ref[0],
                                 jnp.zeros((span, cout), o_ref.dtype))


def _run_fused_pair(x, w1, b1, w2, b2, residuals, *, qt, hb, offsets1,
                    offsets2, p2_left, span_mid, t_valid, needs_mask,
                    mid_residual, compute_dtype, vmem_limit):
    N, L_in, Cin = x.shape
    C = w1.shape[1]
    cout = w2.shape[1]
    assert L_in % qt == 0 and qt % hb == 0
    R = qt // hb
    NB = L_in // hb
    n_tiles = L_in // qt

    x = x.astype(compute_dtype)
    w1 = w1.astype(compute_dtype)
    w2 = w2.astype(compute_dtype)
    b1 = b1.astype(jnp.float32).reshape(1, C)
    b2 = b2.astype(jnp.float32).reshape(1, cout)
    residuals = tuple(r.astype(compute_dtype) for r in residuals)

    kernel = functools.partial(
        _fused_pair_kernel, n_res=len(residuals), cin=Cin, cmid=C,
        offsets1=tuple(offsets1), offsets2=tuple(offsets2), span=qt,
        p2_left=p2_left, span_mid=span_mid, t_valid=t_valid,
        needs_mask=needs_mask, mid_residual=mid_residual, n_in_main=n_tiles,
        slope=LRELU_SLOPE)

    in_specs = _x_halo_specs(qt, hb, Cin, R, NB) + [
        pl.BlockSpec((w1.shape[0], C), lambda n, t: (0, 0)),
        pl.BlockSpec((1, C), lambda n, t: (0, 0)),
        pl.BlockSpec((w2.shape[0], cout), lambda n, t: (0, 0)),
        pl.BlockSpec((1, cout), lambda n, t: (0, 0)),
    ] + [pl.BlockSpec((1, qt, cout), lambda n, t: (n, t, 0))
         for _ in residuals]

    return pl.pallas_call(
        kernel,
        out_shape=jax.ShapeDtypeStruct((N, L_in, cout), compute_dtype),
        grid=(N, n_tiles),
        in_specs=in_specs,
        out_specs=pl.BlockSpec((1, qt, cout), lambda n, t: (n, t, 0)),
        compiler_params=pltpu.CompilerParams(
            dimension_semantics=("parallel", "parallel"),
            vmem_limit_bytes=vmem_limit),
    )(x, x, x, w1, b1, w2, b2, *residuals)


def fused_res_pair(x, t_len, w1, b1, d1, w2, b2, d2, *, tile_t, mid_residual,
                   residuals=(), compute_dtype=jnp.float32,
                   vmem_limit=_DEFAULT_VMEM_LIMIT):
    """Fused (conv1 -> conv2 + residual) pair, or None when infeasible."""
    N, L_in, Cin = x.shape
    K1, cw1, C = w1.shape
    K2, cw2, cout = w2.shape
    if Cin % 8 != 0 or C % 8 != 0 or cw1 != Cin or cw2 != C:
        return None
    n_tiles = _cdiv(t_len, tile_t)
    if L_in != n_tiles * tile_t:
        return None
    p1 = ((K1 - 1) * d1) // 2
    p1r = (K1 - 1) * d1 - p1
    p2 = ((K2 - 1) * d2) // 2
    p2r = (K2 - 1) * d2 - p2
    need = max(p1 + p2, p1r + p2r)
    hb = _pick_halo(need, tile_t, _min_halo(compute_dtype))
    if hb is None:
        return None
    span_mid = tile_t + p2 + p2r
    offsets1 = tuple(hb - p2 - p1 + k * d1 for k in range(K1))
    offsets2 = tuple(k * d2 for k in range(K2))
    w1m = w1.reshape(K1 * Cin, C)
    w2m = w2.reshape(K2 * C, cout)
    needs_mask = t_len < n_tiles * tile_t
    return _run_fused_pair(x, w1m, b1, w2m, b2, residuals, qt=tile_t, hb=hb,
                           offsets1=offsets1, offsets2=offsets2, p2_left=p2,
                           span_mid=span_mid, t_valid=t_len,
                           needs_mask=needs_mask, mid_residual=mid_residual,
                           compute_dtype=compute_dtype, vmem_limit=vmem_limit)


# ----------------------------------------------------------------------------
# Conv wrappers.  Activations are (N, L, C) with L a multiple of the stage
# tile and rows >= logical length kept exactly zero.
# ----------------------------------------------------------------------------
def conv1d_same(x, t_len, w, b, *, tile_t, dilation=1, pre_slope=None,
                pre_scale=None, post_tanh=False, residuals=(),
                compute_dtype=jnp.float32, vmem_limit=_DEFAULT_VMEM_LIMIT):
    N, L_in, Cin = x.shape
    K, _, Cout = w.shape
    p = ((K - 1) * dilation) // 2
    n_tiles = _cdiv(t_len, tile_t)
    assert L_in == n_tiles * tile_t, (L_in, t_len, tile_t)
    hb = _pick_halo(max(p, (K - 1) * dilation - p), tile_t,
                    _min_halo(compute_dtype))
    assert hb is not None, "conv halo does not fit the time tile"
    offsets = tuple(hb - p + k * dilation for k in range(K))
    w2 = w.reshape(K * Cin, Cout)
    mask_rows = t_len if t_len < n_tiles * tile_t else None
    return _run_conv(x, w2, b, residuals, qt=tile_t, hb=hb, offsets=offsets,
                     n_out_tiles=n_tiles, mask_rows=mask_rows,
                     pre_slope=pre_slope, pre_scale=pre_scale,
                     post_tanh=post_tanh, compute_dtype=compute_dtype,
                     vmem_limit=vmem_limit)


def conv_transpose1d(x, t_len, wt, b, *, stride, padding, tile_t,
                     pre_slope=None, pre_scale=None,
                     compute_dtype=jnp.float32,
                     vmem_limit=_DEFAULT_VMEM_LIMIT):
    """ConvTranspose1d.  wt: (Cin, Cout, K) in native PyTorch layout."""
    N, L_in, Cin = x.shape
    _, Cout, K = wt.shape
    s, pq = stride, padding
    t_out = (t_len - 1) * s - 2 * pq + K
    n_tiles = _cdiv(t_out, tile_t)

    # Polyphase path: one grid step produces all s phases, no zeros multiplied.
    if tile_t % s == 0 and t_out % s == 0:
        Q = tile_t // s
        taps = []                                # (phase, input shift, tap k)
        for r in range(s):
            k = (r + pq) % s
            a = (r + pq) // s
            m = 0
            while k < K:
                taps.append((r, a - m, k))
                m += 1
                k += s
        deltas = sorted({d for (_, d, _) in taps})
        hb = _pick_halo(max(max(-deltas[0], 0), max(deltas[-1], 0)), Q,
                        _min_halo(compute_dtype))
        if hb is not None and n_tiles * Q <= L_in and L_in % Q == 0:
            didx = {d: i for i, d in enumerate(deltas)}
            wcomb = jnp.zeros((len(deltas) * Cin, s * Cout), jnp.float32)
            for (r, d, k) in taps:
                i = didx[d]
                wcomb = wcomb.at[i * Cin:(i + 1) * Cin,
                                 r * Cout:(r + 1) * Cout].set(wt[:, :, k])
            b2 = jnp.tile(b, s)
            offsets = tuple(hb + d for d in deltas)
            valid_q = t_out // s
            mask_rows = valid_q if valid_q < n_tiles * Q else None
            y = _run_conv(x, wcomb, b2, (), qt=Q, hb=hb, offsets=offsets,
                          n_out_tiles=n_tiles, mask_rows=mask_rows,
                          pre_slope=pre_slope, pre_scale=pre_scale,
                          post_tanh=False, compute_dtype=compute_dtype,
                          vmem_limit=vmem_limit)
            # (N, Tq, s*Cout) -> (N, Tq*s, Cout): free row-major reshape.
            return y.reshape(N, n_tiles * tile_t, Cout), t_out

    # Correctness-only fallback: zero-insertion upsample + flipped conv.
    L_up = n_tiles * tile_t
    x_up = jnp.zeros((N, L_up, Cin), x.dtype)
    x_up = x_up.at[:, 0:(t_len - 1) * s + 1:s, :].set(x[:, :t_len, :])
    pad_left = K - 1 - pq
    hb = _pick_halo(max(pad_left, (K - 1) - pad_left), tile_t,
                    _min_halo(compute_dtype))
    assert hb is not None, "transposed-conv halo does not fit the time tile"
    w_conv = jnp.transpose(jnp.flip(wt, axis=2), (2, 0, 1))     # (K, Cin, Cout)
    w2 = w_conv.reshape(K * Cin, Cout)
    offsets = tuple(hb - pad_left + k for k in range(K))
    mask_rows = t_out if t_out < L_up else None
    y = _run_conv(x_up, w2, b, (), qt=tile_t, hb=hb, offsets=offsets,
                  n_out_tiles=n_tiles, mask_rows=mask_rows,
                  pre_slope=pre_slope, pre_scale=pre_scale, post_tanh=False,
                  compute_dtype=compute_dtype, vmem_limit=vmem_limit)
    return y, t_out


# ----------------------------------------------------------------------------
# Forward pass (mirrors Generator.forward); residual adds, xs accumulation,
# /num_kernels and leaky-relu pre-activations fused into the conv epilogues.
# ----------------------------------------------------------------------------
def _resblock1(p, x, t_len, dils, xs_prev, *, tile_t, compute_dtype,
               vmem_limit):
    t = x
    n = len(dils)
    for i, ((w1, b1), (w2, b2), d) in enumerate(zip(p['c1'], p['c2'], dils)):
        res = (xs_prev,) if (i == n - 1 and xs_prev is not None) else ()
        y = fused_res_pair(t, t_len, w1, b1, d, w2, b2, 1, tile_t=tile_t,
                           mid_residual=False, residuals=res,
                           compute_dtype=compute_dtype, vmem_limit=vmem_limit)
        if y is None:                            # unfused fallback
            a = conv1d_same(t, t_len, w1, b1, tile_t=tile_t, dilation=d,
                            pre_slope=LRELU_SLOPE, compute_dtype=compute_dtype,
                            vmem_limit=vmem_limit)
            y = conv1d_same(a, t_len, w2, b2, tile_t=tile_t, dilation=1,
                            pre_slope=LRELU_SLOPE, residuals=(t,) + res,
                            compute_dtype=compute_dtype,
                            vmem_limit=vmem_limit)
        t = y
    return t                     # == resblock(x) (+ xs_prev, fused)


def _resblock2(p, x, t_len, dils, xs_prev, *, tile_t, compute_dtype,
               vmem_limit):
    convs = list(zip(p['c'], dils))
    t = x
    i = 0
    while i < len(convs):
        if i + 1 < len(convs):
            (w1, b1), d1 = convs[i]
            (w2, b2), d2 = convs[i + 1]
            ends_chain = (i + 2 == len(convs))
            res = (xs_prev,) if (ends_chain and xs_prev is not None) else ()
            y = fused_res_pair(t, t_len, w1, b1, d1, w2, b2, d2,
                               tile_t=tile_t, mid_residual=True, residuals=res,
                               compute_dtype=compute_dtype,
                               vmem_limit=vmem_limit)
            if y is not None:
                t = y
                i += 2
                continue
        (w, b), d = convs[i]
        is_last = (i == len(convs) - 1)
        res = (t,) + ((xs_prev,) if (is_last and xs_prev is not None) else ())
        t = conv1d_same(t, t_len, w, b, tile_t=tile_t, dilation=d,
                        pre_slope=LRELU_SLOPE, residuals=res,
                        compute_dtype=compute_dtype, vmem_limit=vmem_limit)
        i += 1
    return t


def generator_forward(params, x, cfg, *, tile_t=128, max_tile=2048,
                      compute_dtype=jnp.float32,
                      vmem_limit_bytes=_DEFAULT_VMEM_LIMIT):
    """x: (N, C_in, T) in PyTorch NCT layout; returns (N, 1, T_out) float32."""
    rks = cfg['resblock_kernel_sizes']
    rds = cfg['resblock_dilation_sizes']
    ur = cfg['upsample_rates']
    uk = cfg['upsample_kernel_sizes']
    nk = len(rks)

    N, _, t_len = x.shape
    h = jnp.transpose(x, (0, 2, 1)).astype(compute_dtype)
    L0 = _cdiv(t_len, tile_t) * tile_t
    h = jnp.pad(h, ((0, 0), (0, L0 - t_len), (0, 0)))   # only XLA pad used

    kw = dict(compute_dtype=compute_dtype, vmem_limit=vmem_limit_bytes)

    w, b = params['conv_pre']
    h = conv1d_same(h, t_len, w, b, tile_t=tile_t, **kw)
    # TODO(synk): gin_channels / self.cond(g) conditioning not implemented.

    tile_s = tile_t
    for i in range(len(ur)):
        s = ur[i]
        # Per-stage tile: grow with the stride (polyphase always triggers),
        # cap once the stage is mem-bound and the stride divides the tile.
        if tile_s * s <= max_tile or tile_s % s != 0:
            tile_s = tile_s * s
        wt, b = params['ups'][i]
        # F.leaky_relu and the previous stage's xs/num_kernels are fused in.
        h, t_len = conv_transpose1d(
            h, t_len, wt, b, stride=s, padding=(uk[i] - s) // 2,
            tile_t=tile_s, pre_slope=LRELU_SLOPE,
            pre_scale=(1.0 / nk if i > 0 else None), **kw)
        xs = None
        for j in range(nk):
            rb = params['resblocks'][i * nk + j]
            if cfg['resblock'] == '1':
                xs = _resblock1(rb, h, t_len, rds[j], xs, tile_t=tile_s, **kw)
            else:
                xs = _resblock2(rb, h, t_len, rds[j], xs, tile_t=tile_s, **kw)
        h = xs      # division by num_kernels is folded into the next conv

    w, b = params['conv_post']                       # (7, ch, 1)
    h = conv1d_same(h, t_len, w, b, tile_t=tile_s, pre_slope=0.01,
                    pre_scale=1.0 / nk, post_tanh=True, **kw)
    y = h[:, :t_len, :]                              # (N, T, 1), no 128x pad
    return jnp.transpose(y, (0, 2, 1)).astype(jnp.float32)


# ----------------------------------------------------------------------------
# Synthetic parameter init (weight_norm is a reparametrization only; effective
# weights are sampled directly).  Conv weights stored as (K, Cin, Cout);
# ConvTranspose weights in native (Cin, Cout, K).
# ----------------------------------------------------------------------------
def init_generator_params(key, cfg):
    keys = iter(jax.random.split(key, 1024))

    def conv_w(k, cin, cout):
        std = (1.0 / (k * cin)) ** 0.5
        return std * jax.random.normal(next(keys), (k, cin, cout), jnp.float32)

    def bias(c):
        return 0.1 * jax.random.normal(next(keys), (c,), jnp.float32)

    uic = cfg['upsample_initial_channel']
    params = {'conv_pre': (conv_w(7, cfg['initial_channel'], uic), bias(uic))}
    params['ups'] = []
    ch = uic
    for i, (u, k) in enumerate(zip(cfg['upsample_rates'],
                                   cfg['upsample_kernel_sizes'])):
        cin, cout = uic // 2 ** i, uic // 2 ** (i + 1)
        std = (1.0 * u / (k * cin)) ** 0.5
        wt = std * jax.random.normal(next(keys), (cin, cout, k), jnp.float32)
        params['ups'].append((wt, bias(cout)))
        ch = cout
    params['resblocks'] = []
    for i in range(len(cfg['upsample_rates'])):
        c = uic // 2 ** (i + 1)
        for k, d in zip(cfg['resblock_kernel_sizes'],
                        cfg['resblock_dilation_sizes']):
            if cfg['resblock'] == '1':
                rb = {'c1': [(conv_w(k, c, c), bias(c)) for _ in d],
                      'c2': [(conv_w(k, c, c), bias(c)) for _ in d]}
            else:
                rb = {'c': [(conv_w(k, c, c), bias(c)) for _ in d]}
            params['resblocks'].append(rb)
    params['conv_post'] = (conv_w(7, ch, 1), bias(1))
    return params


# ----------------------------------------------------------------------------
# Pure-XLA reference (mirrors the PyTorch module exactly) for verification.
# ----------------------------------------------------------------------------
def _leaky(x, slope):
    return jnp.where(x >= 0, x, slope * x)


def _ref_conv_same(x, w, b, dilation=1):
    K = w.shape[0]
    p = ((K - 1) * dilation) // 2
    y = lax.conv_general_dilated(
        x, w, window_strides=(1,), padding=[(p, p)], rhs_dilation=(dilation,),
        dimension_numbers=('NTC', 'TIO', 'NTC'))
    return y + b.reshape(1, 1, -1)


def _ref_conv_transpose(x, wt, b, stride, padding):
    N, T, Cin = x.shape
    _, Cout, K = wt.shape
    x_up = jnp.zeros((N, (T - 1) * stride + 1, Cin), x.dtype)
    x_up = x_up.at[:, ::stride, :].set(x)
    w_conv = jnp.transpose(jnp.flip(wt, axis=2), (2, 0, 1))
    p = K - 1 - padding
    y = lax.conv_general_dilated(
        x_up, w_conv, window_strides=(1,), padding=[(p, p)],
        dimension_numbers=('NTC', 'TIO', 'NTC'))
    return y + b.reshape(1, 1, -1)


def _ref_resblock1(p, x, dils):
    for (w1, b1), (w2, b2), d in zip(p['c1'], p['c2'], dils):
        xt = _ref_conv_same(_leaky(x, LRELU_SLOPE), w1, b1, d)
        xt = _ref_conv_same(_leaky(xt, LRELU_SLOPE), w2, b2, 1)
        x = xt + x
    return x


def _ref_resblock2(p, x, dils):
    for (w, b), d in zip(p['c'], dils):
        xt = _ref_conv_same(_leaky(x, LRELU_SLOPE), w, b, d)
        x = xt + x
    return x


def ref_generator_forward(params, x, cfg):
    rds = cfg['resblock_dilation_sizes']
    ur = cfg['upsample_rates']
    uk = cfg['upsample_kernel_sizes']
    nk = len(cfg['resblock_kernel_sizes'])
    h = jnp.transpose(x, (0, 2, 1)).astype(jnp.float32)
    w, b = params['conv_pre']
    h = _ref_conv_same(h, w, b, 1)
    for i in range(len(ur)):
        h = _leaky(h, LRELU_SLOPE)
        wt, b = params['ups'][i]
        h = _ref_conv_transpose(h, wt, b, ur[i], (uk[i] - ur[i]) // 2)
        xs = None
        for j in range(nk):
            rb = params['resblocks'][i * nk + j]
            y = (_ref_resblock1(rb, h, rds[j]) if cfg['resblock'] == '1'
                 else _ref_resblock2(rb, h, rds[j]))
            xs = y if xs is None else xs + y
        h = xs / nk
    h = _leaky(h, 0.01)
    w, b = params['conv_post']
    h = jnp.tanh(_ref_conv_same(h, w, b, 1))
    return jnp.transpose(h, (0, 2, 1))


# ----------------------------------------------------------------------------
def _unit_checks():
    """Tight per-kernel checks of the tiling / halo / masking / fusion paths."""
    tile = 64
    ks = jax.random.split(jax.random.PRNGKey(42), 16)

    def pad_t(x):
        return jnp.pad(x, ((0, 0), (0, _cdiv(x.shape[1], tile) * tile
                                    - x.shape[1]), (0, 0)))

    # (a) dilated 'same' conv: multi-tile, real-neighbour halos, tail mask.
    t_len, cin, cout, K, d = 150, 16, 32, 5, 3
    xl = jax.random.normal(ks[0], (2, t_len, cin), jnp.float32)
    w = 0.02 * jax.random.normal(ks[1], (K, cin, cout), jnp.float32)
    b = 0.02 * jax.random.normal(ks[2], (cout,), jnp.float32)
    y = conv1d_same(pad_t(xl), t_len, w, b, tile_t=tile, dilation=d)
    y_ref = _ref_conv_same(xl, w, b, d)
    assert float(jnp.max(jnp.abs(y[:, :t_len] - y_ref))) < 3e-3
    assert float(jnp.max(jnp.abs(y[:, t_len:]))) == 0.0

    # (b) transposed conv, polyphase path (stride divides tile).
    t_len, cin, cout, K, s, pq = 50, 16, 8, 8, 4, 2
    xl = jax.random.normal(ks[3], (2, t_len, cin), jnp.float32)
    wt = 0.02 * jax.random.normal(ks[4], (cin, cout, K), jnp.float32)
    b = 0.02 * jax.random.normal(ks[5], (cout,), jnp.float32)
    y, t_out = conv_transpose1d(pad_t(xl), t_len, wt, b, stride=s, padding=pq,
                                tile_t=tile)
    y_ref = _ref_conv_transpose(xl, wt, b, s, pq)
    assert t_out == y_ref.shape[1]
    assert float(jnp.max(jnp.abs(y[:, :t_out] - y_ref))) < 3e-3
    assert float(jnp.max(jnp.abs(y[:, t_out:]))) == 0.0

    # (c) transposed conv, zero-insertion fallback (stride !| t_out grid).
    s, K, pq = 3, 6, 1
    wt = 0.02 * jax.random.normal(ks[6], (cin, cout, K), jnp.float32)
    y, t_out = conv_transpose1d(pad_t(xl), t_len, wt, b, stride=s, padding=pq,
                                tile_t=tile)
    y_ref = _ref_conv_transpose(xl, wt, b, s, pq)
    assert t_out == y_ref.shape[1]
    assert float(jnp.max(jnp.abs(y[:, :t_out] - y_ref))) < 3e-3
    assert float(jnp.max(jnp.abs(y[:, t_out:]))) == 0.0

    # (d) fused residual pair: ResBlock1-style (with xs residual) and
    #     ResBlock2-style, multi-tile with halos and tail mask.
    t_len, C, K, d1 = 150, 16, 5, 3
    xl = jax.random.normal(ks[7], (2, t_len, C), jnp.float32)
    xs = jax.random.normal(ks[8], (2, t_len, C), jnp.float32)
    w1 = 0.02 * jax.random.normal(ks[9], (K, C, C), jnp.float32)
    b1 = 0.02 * jax.random.normal(ks[10], (C,), jnp.float32)
    w2 = 0.02 * jax.random.normal(ks[11], (K, C, C), jnp.float32)
    b2 = 0.02 * jax.random.normal(ks[12], (C,), jnp.float32)

    y = fused_res_pair(pad_t(xl), t_len, w1, b1, d1, w2, b2, 1, tile_t=tile,
                       mid_residual=False, residuals=(pad_t(xs),))
    assert y is not None
    ref = _ref_conv_same(
        _leaky(_ref_conv_same(_leaky(xl, LRELU_SLOPE), w1, b1, d1),
               LRELU_SLOPE), w2, b2, 1) + xl + xs
    assert float(jnp.max(jnp.abs(y[:, :t_len] - ref))) < 5e-3
    assert float(jnp.max(jnp.abs(y[:, t_len:]))) == 0.0

    y2 = fused_res_pair(pad_t(xl), t_len, w1, b1, 1, w2, b2, 3, tile_t=tile,
                        mid_residual=True)
    assert y2 is not None
    x1 = _ref_conv_same(_leaky(xl, LRELU_SLOPE), w1, b1, 1) + xl
    ref2 = _ref_conv_same(_leaky(x1, LRELU_SLOPE), w2, b2, 3) + x1
    assert float(jnp.max(jnp.abs(y2[:, :t_len] - ref2))) < 5e-3
    assert float(jnp.max(jnp.abs(y2[:, t_len:]))) == 0.0

    # (e) narrow (Cout=1) tanh output used by conv_post.
    wp = 0.02 * jax.random.normal(ks[13], (7, C, 1), jnp.float32)
    bp = 0.02 * jax.random.normal(ks[14], (1,), jnp.float32)
    yp = conv1d_same(pad_t(xl), t_len, wp, bp, tile_t=tile, pre_slope=0.01,
                     post_tanh=True)
    yp_ref = jnp.tanh(_ref_conv_same(_leaky(xl, 0.01), wp, bp, 1))
    assert yp.shape[-1] == 1
    assert float(jnp.max(jnp.abs(yp[:, :t_len] - yp_ref))) < 3e-3


if __name__ == "__main__":
    _unit_checks()

    # Config 1: ResBlock1, power-of-two upsample rates (polyphase path).
    cfg1 = dict(initial_channel=4, resblock='1',
                resblock_kernel_sizes=[3, 5],
                resblock_dilation_sizes=[[1, 3, 5], [1, 3, 5]],
                upsample_rates=[4, 4], upsample_initial_channel=32,
                upsample_kernel_sizes=[8, 8])
    params1 = init_generator_params(jax.random.PRNGKey(0), cfg1)
    x1 = jax.random.normal(jax.random.PRNGKey(1), (2, 4, 40), jnp.float32)

    fwd1 = jax.jit(functools.partial(generator_forward, cfg=cfg1, tile_t=64,
                                     compute_dtype=jnp.float32))
    y1 = jax.block_until_ready(fwd1(params1, x1))
    y1_ref = jax.block_until_ready(
        jax.jit(functools.partial(ref_generator_forward, cfg=cfg1))(params1, x1))
    assert y1.shape == (2, 1, 40 * 16), y1.shape
    assert y1_ref.shape == y1.shape
    assert float(jnp.max(jnp.abs(y1 - y1_ref))) < 8e-2

    # Config 2: ResBlock2 + a stride that forces the zero-insertion fallback.
    cfg2 = dict(initial_channel=4, resblock='2',
                resblock_kernel_sizes=[3, 5],
                resblock_dilation_sizes=[[1, 3], [1, 3]],
                upsample_rates=[3, 2], upsample_initial_channel=16,
                upsample_kernel_sizes=[6, 4])
    params2 = init_generator_params(jax.random.PRNGKey(2), cfg2)
    x2 = jax.random.normal(jax.random.PRNGKey(3), (2, 4, 21), jnp.float32)

    fwd2 = jax.jit(functools.partial(generator_forward, cfg=cfg2, tile_t=64,
                                     compute_dtype=jnp.float32))
    y2 = jax.block_until_ready(fwd2(params2, x2))
    y2_ref = jax.block_until_ready(
        jax.jit(functools.partial(ref_generator_forward, cfg=cfg2))(params2, x2))
    assert y2.shape == y2_ref.shape
    assert float(jnp.max(jnp.abs(y2 - y2_ref))) < 8e-2

    # bf16 activations/weights with f32 accumulation (v6e/v7x) smoke check.
    fwd2_bf16 = jax.jit(functools.partial(generator_forward, cfg=cfg2,
                                          tile_t=64,
                                          compute_dtype=jnp.bfloat16))
    y2_bf16 = jax.block_until_ready(fwd2_bf16(params2, x2))
    assert y2_bf16.shape == y2.shape
    assert bool(jnp.all(jnp.isfinite(y2_bf16)))
    assert float(jnp.max(jnp.abs(y2_bf16 - y2))) < 0.25

    print("KERNEL_OK")
</pallas_src>

<mosaic_0001>
module attributes {stable_mosaic.version = 11 : i64} {
  func.func @_conv_kernel(%arg0: i32, %arg1: i32, %arg2: memref<1x8x16xf32, #tpu.memory_space<vmem>>, %arg3: memref<1x64x16xf32, #tpu.memory_space<vmem>>, %arg4: memref<1x8x16xf32, #tpu.memory_space<vmem>>, %arg5: memref<80x32xf32, #tpu.memory_space<vmem>>, %arg6: memref<1x32xf32, #tpu.memory_space<vmem>>, %arg7: memref<1x64x32xf32, #tpu.memory_space<vmem>>) attributes {dimension_semantics = [#tpu.dimension_semantics<parallel>, #tpu.dimension_semantics<parallel>], iteration_bounds = array<i64: 2, 3>, scalar_prefetch = 0 : i64, scratch_operands = 0 : i64, tpu.core_type = #tpu.core_type<tc>, window_params = [{transform_indices = @transform_0, window_bounds = array<i64: 1, 8, 16>}, {transform_indices = @transform_1, window_bounds = array<i64: 1, 64, 16>}, {transform_indices = @transform_2, window_bounds = array<i64: 1, 8, 16>}, {pipeline_mode = #tpu.pipeline_mode<synchronous>, transform_indices = @transform_3, window_bounds = array<i64: 80, 32>}, {pipeline_mode = #tpu.pipeline_mode<synchronous>, transform_indices = @transform_4, window_bounds = array<i64: 1, 32>}, {transform_indices = @transform_5, window_bounds = array<i64: 1, 64, 32>}]} {
    %c0 = arith.constant 0 : index
    %c0_0 = arith.constant 0 : index
    %c0_1 = arith.constant 0 : index
    %0 = vector.load %arg2[%c0, %c0_0, %c0_1] : memref<1x8x16xf32, #tpu.memory_space<vmem>>, vector<1x8x16xf32>
    %1 = vector.shape_cast %0 : vector<1x8x16xf32> to vector<8x16xf32>
    %c0_2 = arith.constant 0 : index
    %c0_3 = arith.constant 0 : index
    %c0_4 = arith.constant 0 : index
    %2 = vector.load %arg4[%c0_2, %c0_3, %c0_4] : memref<1x8x16xf32, #tpu.memory_space<vmem>>, vector<1x8x16xf32>
    %3 = vector.shape_cast %2 : vector<1x8x16xf32> to vector<8x16xf32>
    %c0_i32 = arith.constant 0 : i32
    %4 = arith.cmpi eq, %arg1, %c0_i32 : i32
    %cst = arith.constant 0.000000e+00 : f32
    %5 = vector.broadcast %cst : f32 to vector<8x16xf32>
    %6 = arith.select %4, %5, %1 : vector<8x16xf32>
    %c1_i32 = arith.constant 1 : i32
    %7 = arith.addi %arg1, %c1_i32 : i32
    %c3_i32 = arith.constant 3 : i32
    %8 = arith.cmpi sge, %7, %c3_i32 : i32
    %cst_5 = arith.constant 0.000000e+00 : f32
    %9 = vector.broadcast %cst_5 : f32 to vector<8x16xf32>
    %10 = arith.select %8, %9, %3 : vector<8x16xf32>
    %c0_6 = arith.constant 0 : index
    %c0_7 = arith.constant 0 : index
    %c0_8 = arith.constant 0 : index
    %11 = vector.load %arg3[%c0_6, %c0_7, %c0_8] : memref<1x64x16xf32, #tpu.memory_space<vmem>>, vector<1x64x16xf32>
    %12 = vector.shape_cast %11 : vector<1x64x16xf32> to vector<64x16xf32>
    %13 = tpu.concatenate %6, %12, %10 in 0 : vector<8x16xf32>, vector<64x16xf32>, vector<8x16xf32> -> vector<80x16xf32>
    %cst_9 = arith.constant 0.000000e+00 : f32
    %14 = vector.broadcast %cst_9 : f32 to vector<64x32xf32>
    %15 = vector.extract_strided_slice %13 {offsets = [2, 0], sizes = [64, 16], strides = [1, 1]} : vector<80x16xf32> to vector<64x16xf32>
    %c0_10 = arith.constant 0 : index
    %c0_11 = arith.constant 0 : index
    %16 = vector.load %arg5[%c0_10, %c0_11] : memref<80x32xf32, #tpu.memory_space<vmem>>, vector<16x32xf32>
    %cst_12 = arith.constant dense<0.000000e+00> : vector<64x32xf32>
    %17 = tpu.matmul %15, %16, %cst_12 {dimension_numbers = #tpu.dot_dimension_numbers<[1], [0], [0], [1], [0, 0, 1, 1], [], []>} : vector<64x16xf32>, vector<16x32xf32>, vector<64x32xf32> -> vector<64x32xf32>
    %18 = arith.addf %14, %17 : vector<64x32xf32>
    %19 = vector.extract_strided_slice %13 {offsets = [5, 0], sizes = [64, 16], strides = [1, 1]} : vector<80x16xf32> to vector<64x16xf32>
    %c16 = arith.constant 16 : index
    %c0_13 = arith.constant 0 : index
    %20 = vector.load %arg5[%c16, %c0_13] : memref<80x32xf32, #tpu.memory_space<vmem>>, vector<16x32xf32>
    %cst_14 = arith.constant dense<0.000000e+00> : vector<64x32xf32>
    %21 = tpu.matmul %19, %20, %cst_14 {dimension_numbers = #tpu.dot_dimension_numbers<[1], [0], [0], [1], [0, 0, 1, 1], [], []>} : vector<64x16xf32>, vector<16x32xf32>, vector<64x32xf32> -> vector<64x32xf32>
    %22 = arith.addf %18, %21 : vector<64x32xf32>
    %23 = vector.extract_strided_slice %13 {offsets = [8, 0], sizes = [64, 16], strides = [1, 1]} : vector<80x16xf32> to vector<64x16xf32>
    %c32 = arith.constant 32 : index
    %c0_15 = arith.constant 0 : index
    %24 = vector.load %arg5[%c32, %c0_15] : memref<80x32xf32, #tpu.memory_space<vmem>>, vector<16x32xf32>
    %cst_16 = arith.constant dense<0.000000e+00> : vector<64x32xf32>
    %25 = tpu.matmul %23, %24, %cst_16 {dimension_numbers = #tpu.dot_dimension_numbers<[1], [0], [0], [1], [0, 0, 1, 1], [], []>} : vector<64x16xf32>, vector<16x32xf32>, vector<64x32xf32> -> vector<64x32xf32>
    %26 = arith.addf %22, %25 : vector<64x32xf32>
    %27 = vector.extract_strided_slice %13 {offsets = [11, 0], sizes = [64, 16], strides = [1, 1]} : vector<80x16xf32> to vector<64x16xf32>
    %c48 = arith.constant 48 : index
    %c0_17 = arith.constant 0 : index
    %28 = vector.load %arg5[%c48, %c0_17] : memref<80x32xf32, #tpu.memory_space<vmem>>, vector<16x32xf32>
    %cst_18 = arith.constant dense<0.000000e+00> : vector<64x32xf32>
    %29 = tpu.matmul %27, %28, %cst_18 {dimension_numbers = #tpu.dot_dimension_numbers<[1], [0], [0], [1], [0, 0, 1, 1], [], []>} : vector<64x16xf32>, vector<16x32xf32>, vector<64x32xf32> -> vector<64x32xf32>
    %30 = arith.addf %26, %29 : vector<64x32xf32>
    %31 = vector.extract_strided_slice %13 {offsets = [14, 0], sizes = [64, 16], strides = [1, 1]} : vector<80x16xf32> to vector<64x16xf32>
    %c64 = arith.constant 64 : index
    %c0_19 = arith.constant 0 : index
    %32 = vector.load %arg5[%c64, %c0_19] : memref<80x32xf32, #tpu.memory_space<vmem>>, vector<16x32xf32>
    %cst_20 = arith.constant dense<0.000000e+00> : vector<64x32xf32>
    %33 = tpu.matmul %31, %32, %cst_20 {dimension_numbers = #tpu.dot_dimension_numbers<[1], [0], [0], [1], [0, 0, 1, 1], [], []>} : vector<64x16xf32>, vector<16x32xf32>, vector<64x32xf32> -> vector<64x32xf32>
    %34 = arith.addf %30, %33 : vector<64x32xf32>
    %c0_21 = arith.constant 0 : index
    %c0_22 = arith.constant 0 : index
    %35 = vector.load %arg6[%c0_21, %c0_22] : memref<1x32xf32, #tpu.memory_space<vmem>>, vector<1x32xf32>
    %36 = vector.broadcast %35 : vector<1x32xf32> to vector<64x32xf32>
    %37 = arith.addf %34, %36 : vector<64x32xf32>
    %c0_23 = arith.constant 0 : index
    %c0_24 = arith.constant 0 : index
    %c0_25 = arith.constant 0 : index
    %38 = vector.load %arg7[%c0_23, %c0_24, %c0_25] : memref<1x64x32xf32, #tpu.memory_space<vmem>>, vector<1x64x32xf32>
    %39 = vector.shape_cast %38 : vector<1x64x32xf32> to vector<64x32xf32>
    %40 = vector.shape_cast %37 : vector<64x32xf32> to vector<1x64x32xf32>
    tpu.vector_store %arg7[%c0_23, %c0_24, %c0_25], %40 {strides = array<i32>} : memref<1x64x32xf32, #tpu.memory_space<vmem>>, vector<1x64x32xf32>,
    %c2_i32 = arith.constant 2 : i32
    %41 = arith.cmpi eq, %arg1, %c2_i32 : i32
    %42 = arith.extui %41 : i1 to i32
    %c0_i32_26 = arith.constant 0 : i32
    %43 = arith.cmpi ne, %42, %c0_i32_26 : i32
    scf.if %43 {
      %c64_i32 = arith.constant 64 : i32
      %44 = arith.muli %arg1, %c64_i32 : i32
      %45 = tpu.iota {dimensions = array<i32: 0>} : vector<64x32xi32>
      %46 = vector.broadcast %44 : i32 to vector<64x32xi32>
      %47 = arith.addi %46, %45 : vector<64x32xi32>
      %c150_i32 = arith.constant 150 : i32
      %48 = vector.broadcast %c150_i32 : i32 to vector<64x32xi32>
      %49 = arith.cmpi slt, %47, %48 : vector<64x32xi32>
      %c0_27 = arith.constant 0 : index
      %c0_28 = arith.constant 0 : index
      %c0_29 = arith.constant 0 : index
      %50 = vector.load %arg7[%c0_27, %c0_28, %c0_29] : memref<1x64x32xf32, #tpu.memory_space<vmem>>, vector<1x64x32xf32>
      %51 = vector.shape_cast %50 : vector<1x64x32xf32> to vector<64x32xf32>
      %cst_30 = arith.constant 0.000000e+00 : f32
      %52 = vector.broadcast %cst_30 : f32 to vector<64x32xf32>
      %53 = arith.select %49, %51, %52 : vector<64x32xi1>, vector<64x32xf32>
      %c0_31 = arith.constant 0 : index
      %c0_32 = arith.constant 0 : index
      %c0_33 = arith.constant 0 : index
      %54 = vector.load %arg7[%c0_31, %c0_32, %c0_33] : memref<1x64x32xf32, #tpu.memory_space<vmem>>, vector<1x64x32xf32>
      %55 = vector.shape_cast %54 : vector<1x64x32xf32> to vector<64x32xf32>
      %56 = vector.shape_cast %53 : vector<64x32xf32> to vector<1x64x32xf32>
      tpu.vector_store %arg7[%c0_31, %c0_32, %c0_33], %56 {strides = array<i32>} : memref<1x64x32xf32, #tpu.memory_space<vmem>>, vector<1x64x32xf32>,
    } else {
    }
    return
  }
  func.func @transform_0(%arg0: i32, %arg1: i32) -> (i32, i32, i32) {
    %c8_i32 = arith.constant 8 : i32
    %0 = arith.muli %arg1, %c8_i32 : i32
    %c1_i32 = arith.constant 1 : i32
    %1 = arith.subi %0, %c1_i32 : i32
    %c0_i32 = arith.constant 0 : i32
    %2 = arith.maxsi %1, %c0_i32 : i32
    %c0_i32_0 = arith.constant 0 : i32
    %c0_i32_1 = arith.constant 0 : i32
    return %arg0, %2, %c0_i32_0 : i32, i32, i32
  }
  func.func @transform_1(%arg0: i32, %arg1: i32) -> (i32, i32, i32) {
    %c0_i32 = arith.constant 0 : i32
    %c0_i32_0 = arith.constant 0 : i32
    return %arg0, %arg1, %c0_i32 : i32, i32, i32
  }
  func.func @transform_2(%arg0: i32, %arg1: i32) -> (i32, i32, i32) {
    %c1_i32 = arith.constant 1 : i32
    %0 = arith.addi %arg1, %c1_i32 : i32
    %c8_i32 = arith.constant 8 : i32
    %1 = arith.muli %0, %c8_i32 : i32
    %c23_i32 = arith.constant 23 : i32
    %2 = arith.minsi %1, %c23_i32 : i32
    %c0_i32 = arith.constant 0 : i32
    %c0_i32_0 = arith.constant 0 : i32
    return %arg0, %2, %c0_i32 : i32, i32, i32
  }
  func.func @transform_3(%arg0: i32, %arg1: i32) -> (i32, i32) {
    %c0_i32 = arith.constant 0 : i32
    %c0_i32_0 = arith.constant 0 : i32
    %c0_i32_1 = arith.constant 0 : i32
    return %c0_i32, %c0_i32_0 : i32, i32
  }
  func.func @transform_4(%arg0: i32, %arg1: i32) -> (i32, i32) {
    %c0_i32 = arith.constant 0 : i32
    %c0_i32_0 = arith.constant 0 : i32
    %c0_i32_1 = arith.constant 0 : i32
    return %c0_i32, %c0_i32_0 : i32, i32
  }
  func.func @transform_5(%arg0: i32, %arg1: i32) -> (i32, i32, i32) {
    %c0_i32 = arith.constant 0 : i32
    %c0_i32_0 = arith.constant 0 : i32
    return %arg0, %arg1, %c0_i32 : i32, i32, i32
  }
}

</mosaic_0001>

<bundles_post_ra>
// kernel: tpu_custom_call.1
= control target key start
LH: loop header
LB: loop body
LE: loop exit
PB: predicated region body
PF: predicated region fallthrough
CT: control target
= control target key end

     0   :  { %s1712_s18 = smov 0   ;;  %s1714_s19 = smov 0   ;;  %s2047_s0 = inlined_call_operand.vmem [shape: f32[2,192,16], index: 0, kind: input, shape index: {}]   ;;  %s2048_s1 = inlined_call_operand.vmem [shape: f32[2,192,16], index: 1, kind: input, shape index: {}]   ;;  %s2049_s2 = inlined_call_operand.vmem [shape: f32[2,192,16], index: 2, kind: input, shape index: {}]   ;;  %s2050_s3 = inlined_call_operand.vmem [shape: f32[80,32], index: 3, kind: input, shape index: {}]   ;;  %s2051_s4 = inlined_call_operand.vmem [shape: f32[1,32], index: 4, kind: input, shape index: {}]   ;;  %s2052_s5 = inlined_call_operand.vmem [shape: f32[2,192,32], index: 5, kind: output, shape index: {}]  }
   0x1   :  { %s1716_s20 = smov 0   ;;  %s1718_s21 = smov 0  }
   0x2   :  { %s1720_s22 = smov 0  }
   0x3 LB: > { %s24_s23 = sadd.s32 1, %s1672_s20  ;;  %s27_s24 = sadd.s32 1, %s1676_s21  ;;  %s1680_s22 = sphi %s1720_s22, %s15_s22   ;;  %s1676_s21 = sphi %s1718_s21, %s2058_s21   ;;  %s1672_s20 = sphi %s1716_s20, %s2057_s20   ;;  %s1668_s19 = sphi %s1714_s19, %s2056_s19   ;;  %s1664_s18 = sphi %s1712_s18, %s2055_s18  }
   0x4   : > { %p25_p0 = scmp.ge.s32.totalorder %s24_s23, 3  ;;  %p1340_p1 = scmp.ge.s32.totalorder %s1680_s22, 1 }
   0x5   : > { %p270_p2 = scmp.lt.s32.totalorder %s1680_s22, 7 }
   0x6   : > { %s2060_s23 = smov (%p25_p0, %s24_s23), 0  ;;  %s2062_s24 = smov (!%p25_p0, %s27_s24), %s1676_s21 }
   0x7   : > { %p271_p3 = pnand %p1340_p1, %p270_p2  ;;  %p29_p4 = scmp.ge.s32.totalorder %s2062_s24, 2 }
   0x8   : > { %v695_v0 = vld [vmem:[%s2050_s3 + $0x20] sm:$0xff] (!%p271_p3)  ;;  %v696_v1 = vld [vmem:[%s2050_s3 + $0x28] sm:$0xff] (!%p271_p3)  ;;  %s1751_s29 = sshll.u32 (!%p271_p3), %s1664_s18, 3  ;;  %p334_p5 = scmp.lt.s32.totalorder (!%p271_p3), %s1668_s19, 1  ;;  %v405_v2 = vld [vmem:[%s2050_s3 + $0x10] sm:$0xff] (!%p271_p3)  ;;  %vm434_vm0 = vcmask (!%p271_p3), 130048  }
   0x9   : > { %s2064_s24 = smov (%p29_p4, %s2062_s24), 0  ;;  %274 = sbr.rel (%p271_p3) target bundleno = 295 (0x127), region = 40 }
   0xa   : > { %v1756_v3 = vpack.c.bf16 (!%p271_p3), %v696_v1, %v695_v0  ;;  %p349_p6 = scmp.lt.s32.totalorder (!%p271_p3), %s1751_s29, 23  ;;  %v406_v4 = vld [vmem:[%s2050_s3 + $0x18] sm:$0xff] (!%p271_p3)  ;;  %v826_v5 = vld [vmem:[%s2050_s3 + $0x30] sm:$0xff] (!%p271_p3)  ;;  %s1769_s13 = sadd.s32 (!%p271_p3), 4294967295, %s1751_s29  ;;  %v403_v9 = vld [vmem:[%s2050_s3] sm:$0xff] (!%p271_p3)  ;;  %vm829_vm1 = vcmask (!%p271_p3), 1044480  }
   0xb   : > { %v827_v6 = vld [vmem:[%s2050_s3 + $0x38] sm:$0xff] (!%p271_p3)  ;;  %v1541_v7 = vpack.c.bf16 (!%p271_p3), %v406_v4, %v405_v2  ;;  %v404_v10 = vld [vmem:[%s2050_s3 + $0x8] sm:$0xff] (!%p271_p3)  ;;  %p332_p7 = scmp.gt.s32.totalorder (!%p271_p3), %s1769_s13, 0  ;;  %p1343_p8 = scmp.lt.s32.totalorder (!%p271_p3), %s1769_s13, 23  ;;  %v976_v12 = vld [vmem:[%s2050_s3 + $0x40] sm:$0xff] (!%p271_p3)  ;;  %vm416_vm2 = vcmask (!%p271_p3), 1042432  }
   0xc   : > { %v1553_v8 = vpack.c.bf16 (!%p271_p3), %v827_v6, %v826_v5  ;;  %1550 = vmatprep.subr.bf16.mxu0 (!%p271_p3), %v1756_v3  ;;  %v1779_v11 = vpack.c.bf16 (!%p271_p3), %v404_v10, %v403_v9  ;;  %p384_p9 = scmp.eq.s32.totalorder (!%p271_p3), %s1664_s18, 0  ;;  %v977_v13 = vld [vmem:[%s2050_s3 + $0x48] sm:$0xff] (!%p271_p3)  ;;  %s1410_s8 = sadd.s32 (!%p271_p3), 8, %s1751_s29  ;;  %vm978_vm3 = vcmask (!%p271_p3), 1041408   ;;  %vm556_vm4 = vcmask (!%p271_p3), 1045504  }
   0xd   : > { %1552 = vmatpush3.bf16.msra.mxu0 (!%p271_p3), %v1756_v3  ;;  %1542 = vmatprep.subr.bf16.mxu1 (!%p271_p3), %v1541_v7  ;;  %s389_s12 = sadd.s32 (!%p271_p3), 1, %s1664_s18  ;;  %v1557_v17 = vpack.c.bf16 (!%p271_p3), %v977_v13, %v976_v12  ;;  %p1839_p10 = scmp.lt.s32.totalorder (!%p271_p3), %s1410_s8, 23  ;;  %vm1140_vm5 = vcmask (!%p271_p3), 261120  }
   0xe   : > { %1544 = vmatpush3.bf16.msra.mxu1 (!%p271_p3), %v1541_v7  ;;  %1554 = vmatprep.subr.bf16.mxu0 (!%p271_p3), %v1553_v8  ;;  %p1843_p11 = scmp.ge.s32.totalorder (!%p271_p3), %s389_s12, 3  ;;  %p1399_p12 = scmp.ne.s32.totalorder (!%p271_p3), %s1664_s18, 2 }
   0xf   : > { %1546 = vmatprep.subr.bf16.mxu1 (!%p271_p3), %v1779_v11 }
  0x10   : > { %s2066_s19 = smov (!%p334_p5, %s1668_s19), 1  ;;  %s2070_s8 = smov (!%p1839_p10, %s1410_s8), 23 }
  0x11   : > { %s350_s25 = scalar_select %p349_p6, %s1751_s29, 23 }
  0x12   : > { %s1782_s26 = smul.u32 24, %s2066_s19  ;;  %s2072_s8 = smov (!%p1839_p10, %s2070_s8), 23 }
  0x13   : > { %s333_s14 = scalar_select %p332_p7, %s1769_s13, 0 }
  0x14   : > { %s352_s27 = sadd.s32 %s1782_s26, %s350_s25  ;;  %s365_s29 = sadd.s32 %s1782_s26, %s2072_s8 }
  0x15   : > { %s1795_s7 = sshll.u32 %s352_s27, 3  ;;  %s2068_s14 = smov (!%p1343_p8, %s333_s14), 23 }
  0x16   : > { %s1802_s11 = scalar_lea.vmem %s2048_s1, %s1795_s7  ;;  %s339_s15 = sadd.s32 %s1782_s26, %s2068_s14 }
  0x17   : > { %v1806_v14 = vld [vmem:[%s1802_s11] sm:$0xff]  ;;  %v1809_v15 = vld [vmem:[%s1802_s11 + $0x8] sm:$0xff]  ;;  %v1812_v16 = vld [vmem:[%s1802_s11 + $0x10] sm:$0xff]  ;;  %s1348_s16 = sshll.u32 %s339_s15, 3  ;;  %s1355_s6 = sshll.u32 %s365_s29, 3 }
  0x18   : > { %1497 = vmatprep.mubr.msk.f32.mxu0 %vm434_vm0, %v1806_v14  ;;  %v830_v18 = vrot.slane %v1806_v14, 3  ;;  %v831_v19 = vrot.slane %v1809_v15, 3  ;;  %v833_v20 = vrot.slane %v1812_v16, 3  ;;  %v1829_v21 = vld [vmem:[%s1802_s11 + $0x18] sm:$0xff]  ;;  %v1835_v24 = vld [vmem:[%s1802_s11 + $0x20] sm:$0xff]  ;;  %s341_s28 = scalar_lea.vmem %s2047_s0, %s1348_s16  ;;  %v418_v25 = vrot.slane %v1806_v14, 5  ;;  %s367_s10 = scalar_lea.vmem %s2049_s2, %s1355_s6 }
  0x19   : > { %1498 = vmatmul.mubr.msk.f32.vlgmr.msra.gmra.mrb[0].mxu0 %vm434_vm0, %v1809_v15  ;;  %v835_v23 = vrot.slane %v1829_v21, 3  ;;  %v420_v26 = vrot.slane %v1809_v15, 5  ;;  %s1637_s30 = scalar_select %p384_p9, 0, 255  ;;  %v422_v28 = vrot.slane %v1812_v16, 5  ;;  %v837_v29 = vrot.slane %v1835_v24, 3 }
  0x1a   : > { %1500 = vmatprep.mubr.msk.f32.mxu0 %vm434_vm0, %v1812_v16  ;;  %1556 = vmatpush3.bf16.msra.mxu0 %v1553_v8  ;;  %v832_v22 = vsel %vm829_vm1, %v830_v18, %v831_v19  ;;  %v834_v27 = vsel %vm829_vm1, %v831_v19, %v833_v20  ;;  %v1862_v31 = vld [vmem:[%s1802_s11 + $0x28] sm:$0xff]  ;;  %v1865_v32 = vld [vmem:[%s1802_s11 + $0x30] sm:$0xff]  ;;  %v424_v37 = vrot.slane %v1829_v21, 5  ;;  %v1885_v41 = vld [vmem:[%s1802_s11 + $0x38] sm:$0xff]  ;;  %v426_v43 = vrot.slane %v1835_v24, 5  ;;  %s1988_s15 = scalar_lea.vmem %s2052_s5, %s1795_s7  ;;  %s1400_s7 = sshll.u32 (!%p1399_p12), %s1664_s18, 6 }
  0x1b   : > { %1558 = vmatprep.subr.bf16.mxu0 %v1557_v17  ;;  %v836_v30 = vsel %vm829_vm1, %v833_v20, %v835_v23  ;;  %v1871_v33 = vld [vmem:[%s341_s28] sm:%s1637_s30]  ;;  %v839_v34 = vrot.slane %v1862_v31, 3  ;;  %v421_v36 = vsel %vm416_vm2, %v418_v25, %v420_v26  ;;  %v423_v38 = vsel %vm416_vm2, %v420_v26, %v422_v28  ;;  %s1640_s26 = scalar_select %p1843_p11, 0, 255 }
  0x1c   : > { %v417_v35 = vrot.slane %v1871_v33, 5  ;;  %v838_v39 = vsel %vm829_vm1, %v835_v23, %v837_v29  ;;  %v841_v40 = vrot.slane %v1865_v32, 3  ;;  %v843_v44 = vrot.slane %v1885_v41, 3 }
  0x1d   : > { %1501 = vmatmul.mubr.msk.f32.gmra.mrb[2].mxu0 %vm434_vm0, %v1829_v21  ;;  %v840_v45 = vsel %vm829_vm1, %v837_v29, %v839_v34  ;;  %v425_v46 = vsel %vm416_vm2, %v422_v28, %v424_v37  ;;  %v428_v47 = vrot.slane %v1862_v31, 5  ;;  %v430_v49 = vrot.slane %v1865_v32, 5  ;;  %v1641_v54 = vld [vmem:[%s367_s10] sm:%s1640_s26] }
  0x1e   : > { %1513 = vmatprep.mubr.msk.f32.mxu0 %vm434_vm0, %v832_v22  ;;  %v419_v42 = vsel %vm416_vm2, %v417_v35, %v418_v25  ;;  %v842_v48 = vsel %vm829_vm1, %v839_v34, %v841_v40  ;;  %v427_v50 = vsel %vm416_vm2, %v424_v37, %v426_v43  ;;  %v844_v51 = vsel %vm829_vm1, %v841_v40, %v843_v44  ;;  %v1398_v35 = vld [vmem:[%s2051_s4] ss:$0 sm:$0xff] }
  0x1f   : > { %1465 = vmatprep.mubr.msk.f32.mxu1 %vm434_vm0, %v419_v42  ;;  %v979_v52 = vrot.slane %v1806_v14, 6  ;;  %v980_v53 = vrot.slane %v1809_v15, 6  ;;  %v982_v55 = vrot.slane %v1812_v16, 6  ;;  %v845_v56 = vrot.slane %v1641_v54, 3 }
  0x20   : > { %1466 = vmatmul.mubr.msk.f32.vlgmr.msra.gmra.mrb[0].mxu1 %vm434_vm0, %v421_v36  ;;  %v429_v57 = vsel %vm416_vm2, %v426_v43, %v428_v47  ;;  %v431_v58 = vsel %vm416_vm2, %v428_v47, %v430_v49  ;;  %v432_v59 = vrot.slane %v1885_v41, 5  ;;  %v558_v60 = vrot.slane %v1806_v14, 2 }
  0x21   : > { %1514 = vmatmul.mubr.msk.f32.vlgmr.msra.gmra.mrb[0].mxu0 %vm434_vm0, %v834_v27  ;;  %1548 = vmatpush3.bf16.msra.mxu1 %v1779_v11  ;;  %v557_v61 = vrot.slane %v1871_v33, 2  ;;  %v846_v62 = vsel %vm829_vm1, %v843_v44, %v845_v56  ;;  %v981_v63 = vsel %vm978_vm3, %v979_v52, %v980_v53  ;;  %v984_v0 = vrot.slane %v1829_v21, 6 }
  0x22   : > { %1516 = vmatprep.mubr.msk.f32.mxu0 %vm434_vm0, %v836_v30  ;;  %1560 = vmatpush3.bf16.msra.mxu0 %v1557_v17  ;;  %v560_v1 = vrot.slane %v1809_v15, 2  ;;  %v433_v2 = vsel %vm416_vm2, %v430_v49, %v432_v59  ;;  %v983_v4 = vsel %vm978_vm3, %v980_v53, %v982_v55  ;;  %v986_v5 = vrot.slane %v1835_v24, 6 }
  0x23   : > { %1468 = vmatprep.mubr.msk.f32.mxu1 %vm434_vm0, %v423_v38  ;;  %1561 = vmatprep.subr.bf16.mxu1 %v1756_v3  ;;  %v559_v6 = vsel %vm556_vm4, %v557_v61, %v558_v60  ;;  %v562_v7 = vrot.slane %v1812_v16, 2  ;;  %v985_v8 = vsel %vm978_vm3, %v982_v55, %v984_v0  ;;  %v988_v9 = vrot.slane %v1862_v31, 6 }
  0x24   : > { %1469 = vmatmul.mubr.msk.f32.gmra.mrb[2].mxu1 %vm434_vm0, %v425_v46  ;;  %v561_v10 = vsel %vm556_vm4, %v558_v60, %v560_v1  ;;  %v564_v11 = vrot.slane %v1829_v21, 2  ;;  %v987_v12 = vsel %vm978_vm3, %v984_v0, %v986_v5  ;;  %v990_v13 = vrot.slane %v1865_v32, 6 }
  0x25   : > { %1517 = vmatmul.mubr.msk.f32.gmra.mrb[2].mxu0 %vm434_vm0, %v838_v39  ;;  %1471 = vmatprep.mubr.msk.f32.mxu1 %vm434_vm0, %v427_v50  ;;  %v563_v14 = vsel %vm556_vm4, %v560_v1, %v562_v7  ;;  %v566_v15 = vrot.slane %v1835_v24, 2  ;;  %v992_v16 = vrot.slane %v1885_v41, 6  ;;  %v989_v17 = vsel %vm978_vm3, %v986_v5, %v988_v9 }
  0x26   : > { %1519 = vmatprep.mubr.msk.f32.mxu0 %vm434_vm0, %v840_v45  ;;  %v565_v18 = vsel %vm556_vm4, %v562_v7, %v564_v11  ;;  %v568_v19 = vrot.slane %v1862_v31, 2  ;;  %v991_v20 = vsel %vm978_vm3, %v988_v9, %v990_v13  ;;  %v994_v21 = vrot.slane %v1641_v54, 6 }
  0x27   : > { %v567_v22 = vsel %vm556_vm4, %v564_v11, %v566_v15  ;;  %v570_v23 = vrot.slane %v1865_v32, 2  ;;  %v993_v25 = vsel %vm978_vm3, %v990_v13, %v992_v16  ;;  %v572_v26 = vrot.slane %v1885_v41, 2 }
  0x28   : > { %1472 = vmatmul.mubr.msk.f32.gmra.mrb[4].mxu1 %vm434_vm0, %v429_v57  ;;  %v995_v27 = vsel %vm978_vm3, %v992_v16, %v994_v21 }
  0x29   : > { %1520 = vmatmul.mubr.msk.f32.gmra.mrb[4].mxu0 %vm434_vm0, %v842_v48  ;;  %1474 = vmatprep.mubr.msk.f32.mxu1 %vm434_vm0, %v431_v58  ;;  %v571_v28 = vsel %vm556_vm4, %v568_v19, %v570_v23  ;;  %v573_v29 = vsel %vm556_vm4, %v570_v23, %v572_v26 }
  0x2a   : > { %1522 = vmatprep.mubr.msk.f32.mxu0 %vm434_vm0, %v844_v51 }
  0x2c   : > { %1475 = vmatmul.mubr.msk.f32.gmra.mrb[6].mxu1 %vm434_vm0, %v433_v2 }
  0x2d   : > { %1523 = vmatmul.mubr.msk.f32.gmra.mrb[6].mxu0 %vm434_vm0, %v846_v62  ;;  %1481 = vmatprep.mubr.msk.f32.mxu1 %vm434_vm0, %v559_v6  ;;  %v1154_v62 = vlaneseq (!%p1399_p12) }
  0x2e   : > { %1529 = vmatprep.mubr.msk.f32.mxu0 %vm434_vm0, %v981_v63  ;;  %v1163_v63 = vstv (!%p1399_p12), %s1400_s7 }
  0x2f   : > { %v1155_v0 = vshrl.u32 (!%p1399_p12), %v1154_v62, 7 }
  0x30   : > { %1482 = vmatmul.mubr.msk.f32.vlgmr.msra.gmra.mrb[0].mxu1 %vm434_vm0, %v561_v10 }
  0x31   : > { %1530 = vmatmul.mubr.msk.f32.vlgmr.msra.gmra.mrb[0].mxu0 %vm434_vm0, %v983_v4  ;;  %1562 = vmatpush3.bf16.msra.mxu1 %v1756_v3  ;;  %v569_v3 = vsel %vm556_vm4, %v566_v15, %v568_v19  ;;  %v1164_v1 = vadd.s32 (!%p1399_p12), %v1163_v63, %v1155_v0  ;;  %v1156_v4 = vadd.s32 (!%p1399_p12), 8, %v1155_v0  ;;  %v1157_v5 = vadd.s32 (!%p1399_p12), 16, %v1155_v0 }
  0x32   : > { %1532 = vmatprep.mubr.msk.f32.mxu0 %vm434_vm0, %v985_v8  ;;  %1484 = vmatprep.mubr.msk.f32.mxu1 %vm434_vm0, %v563_v14  ;;  %v1158_v6 = vadd.s32 (!%p1399_p12), 24, %v1155_v0  ;;  %v1159_v7 = vadd.s32 (!%p1399_p12), 32, %v1155_v0  ;;  %v1160_v8 = vadd.s32 (!%p1399_p12), 40, %v1155_v0  ;;  %v1161_v9 = vadd.s32 (!%p1399_p12), 48, %v1155_v0 }
  0x33   : > { %v1162_v10 = vadd.s32 (!%p1399_p12), 56, %v1155_v0  ;;  %vm1172_vm6 = vcmp.lt.s32.totalorder (!%p1399_p12), %v1164_v1, 150  ;;  %v1165_v11 = vadd.s32 (!%p1399_p12), %v1163_v63, %v1156_v4  ;;  %v1166_v13 = vadd.s32 (!%p1399_p12), %v1163_v63, %v1157_v5 }
  0x34   : > { %1485 = vmatmul.mubr.msk.f32.gmra.mrb[2].mxu1 %vm434_vm0, %v565_v18  ;;  %v1167_v15 = vadd.s32 (!%p1399_p12), %v1163_v63, %v1158_v6  ;;  %v1168_v18 = vadd.s32 (!%p1399_p12), %v1163_v63, %v1159_v7  ;;  %v1170_v21 = vadd.s32 (!%p1399_p12), %v1163_v63, %v1161_v9 }
  0x35   : > { %1533 = vmatmul.mubr.msk.f32.gmra.mrb[2].mxu0 %vm434_vm0, %v987_v12  ;;  %1487 = vmatprep.mubr.msk.f32.mxu1 %vm434_vm0, %v567_v22  ;;  %vm1173_vm7 = vcmp.lt.s32.totalorder (!%p1399_p12), %v1165_v11, 150  ;;  %vm1174_vm8 = vcmp.lt.s32.totalorder (!%p1399_p12), %v1166_v13, 150 }
  0x36   : > { %1535 = vmatprep.mubr.msk.f32.mxu0 %vm434_vm0, %v989_v17  ;;  %vm1175_vm9 = vcmp.lt.s32.totalorder (!%p1399_p12), %v1167_v15, 150  ;;  %vm1176_vm10 = vcmp.lt.s32.totalorder (!%p1399_p12), %v1168_v18, 150  ;;  %vm1178_vm12 = vcmp.lt.s32.totalorder (!%p1399_p12), %v1170_v21, 150 }
  0x38   : > { %1488 = vmatmul.mubr.msk.f32.gmra.mrb[4].mxu1 %vm434_vm0, %v569_v3 }
  0x39   : > { %1536 = vmatmul.mubr.msk.f32.gmra.mrb[4].mxu0 %vm434_vm0, %v991_v20  ;;  %1490 = vmatprep.mubr.msk.f32.mxu1 %vm434_vm0, %v571_v28  ;;  %v1169_v20 = vadd.s32 (!%p1399_p12), %v1163_v63, %v1160_v8 }
  0x3a   : > { %1538 = vmatprep.mubr.msk.f32.mxu0 %vm434_vm0, %v993_v25  ;;  %v1171_v25 = vadd.s32 (!%p1399_p12), %v1163_v63, %v1162_v10 }
  0x3b   : > { %vm1177_vm11 = vcmp.lt.s32.totalorder (!%p1399_p12), %v1169_v20, 150 }
  0x3c   : > { %1491 = vmatmul.mubr.msk.f32.gmra.mrb[6].mxu1 %vm434_vm0, %v573_v29  ;;  %vm1179_vm13 = vcmp.lt.s32.totalorder (!%p1399_p12), %v1171_v25, 150 }
  0x3d   : > { %1539 = vmatmul.mubr.msk.f32.gmra.mrb[6].mxu0 %vm434_vm0, %v995_v27  ;;  %1503 = vmatprep.mubr.msk.f32.mxu1 %vm434_vm0, %v1835_v24 }
  0x40   : > { %1504 = vmatmul.mubr.msk.f32.vlgmr.msra.gmra.mrb[4].mxu1 %vm434_vm0, %v1862_v31 }
  0x41   : > { %1506 = vmatprep.mubr.msk.f32.mxu1 %vm434_vm0, %v1865_v32 }
  0x44   : > { %1507 = vmatmul.mubr.msk.f32.gmra.mrb[6].mxu1 %vm434_vm0, %v1885_v41 }
 0x103   : > { %v1483_v34 = vpop.f32.mrb[0].mxu1 }
 0x104   : > { %v1531_v30 = vpop.f32.mrb[0].mxu0  ;;  %v656_v37 = vpop.f32.mrb[1].mxu1 }
 0x105   : > { %v1078_v33 = vpop.f32.mrb[1].mxu0  ;;  %v1563_v38 = vadd.f32 %v1531_v30, %v1483_v34 }
 0x106   : > { %v1564_v31 = vadd.f32 %v1078_v33, %v656_v37 }
 0x107   : > { %v1133_v32 = vadd.f32 %v1563_v38, %v1398_v35  ;;  %v1486_v40 = vpop.f32.mrb[2].mxu1 }
 0x108   : > { %v1534_v36 = vpop.f32.mrb[2].mxu0  ;;  %v1132_v39 = vadd.f32 %v1564_v31, %v1398_v35  ;;  %v666_v42 = vpop.f32.mrb[3].mxu1 }
 0x109   : > { %v1088_v24 = vpop.f32.mrb[3].mxu0  ;;  %1142 = vst.msk [vmem:[%s1988_s15 + $0x8] sm:$0xff] %vm1140_vm5, %v1133_v32  ;;  %v1565_v43 = vadd.f32 %v1534_v36, %v1486_v40 }
 0x10a   : > { %1141 = vst.msk [vmem:[%s1988_s15] sm:$0xff] %vm1140_vm5, %v1132_v39  ;;  %v1566_v45 = vadd.f32 %v1088_v24, %v666_v42 }
 0x10b   : > { %v1135_v46 = vadd.f32 %v1565_v43, %v1398_v35 }
 0x10c   : > { %v1537_v41 = vpop.f32.mrb[4].mxu0  ;;  %v1134_v47 = vadd.f32 %v1566_v45, %v1398_v35 }
 0x10d   : > { %v1098_v44 = vpop.f32.mrb[5].mxu0  ;;  %1144 = vst.msk [vmem:[%s1988_s15 + $0x18] sm:$0xff] %vm1140_vm5, %v1135_v46 }
 0x10e   : > { %1143 = vst.msk [vmem:[%s1988_s15 + $0x10] sm:$0xff] %vm1140_vm5, %v1134_v47 }
 0x110   : > { %v1540_v48 = vpop.f32.mrb[6].mxu0  ;;  %v1181_v12 = vld [vmem:[%s1988_s15 + $0x8] sm:$0xff] (!%p1399_p12) }
 0x111   : > { %v1108_v49 = vpop.f32.mrb[7].mxu0  ;;  %v1180_v2 = vld [vmem:[%s1988_s15] sm:$0xff] (!%p1399_p12)  ;;  %v1189_v26 = vsel (!%p1399_p12), %vm1173_vm7, %v1181_v12, 0.0 }
 0x112   : > { %v1188_v17 = vsel (!%p1399_p12), %vm1172_vm6, %v1180_v2, 0.0  ;;  %1197 = vst.msk [vmem:[%s1988_s15 + $0x8] sm:$0xff] (!%p1399_p12), %vm1140_vm5, %v1189_v26 }
 0x113   : > { %v1505_v50 = vpop.f32.mrb[4].mxu1  ;;  %1196 = vst.msk [vmem:[%s1988_s15] sm:$0xff] (!%p1399_p12), %vm1140_vm5, %v1188_v17 }
 0x114   : > { %v1567_v51 = vadd.f32 %v1537_v41, %v1505_v50  ;;  %v799_v52 = vpop.f32.mrb[5].mxu1  ;;  %v1183_v16 = vld [vmem:[%s1988_s15 + $0x18] sm:$0xff] (!%p1399_p12) }
 0x115   : > { %v1568_v53 = vadd.f32 %v1098_v44, %v799_v52  ;;  %v1182_v14 = vld [vmem:[%s1988_s15 + $0x10] sm:$0xff] (!%p1399_p12)  ;;  %v1191_v28 = vsel (!%p1399_p12), %vm1175_vm9, %v1183_v16, 0.0 }
 0x116   : > { %v1137_v54 = vadd.f32 %v1567_v51, %v1398_v35  ;;  %v1190_v27 = vsel (!%p1399_p12), %vm1174_vm8, %v1182_v14, 0.0  ;;  %1199 = vst.msk [vmem:[%s1988_s15 + $0x18] sm:$0xff] (!%p1399_p12), %vm1140_vm5, %v1191_v28 }
 0x117   : > { %v1136_v55 = vadd.f32 %v1568_v53, %v1398_v35  ;;  %v1508_v56 = vpop.f32.mrb[6].mxu1  ;;  %1152 = sbr.rel (%p1399_p12) target bundleno = 295 (0x127), region = 44  ;;  %1198 = vst.msk [vmem:[%s1988_s15 + $0x10] sm:$0xff] (!%p1399_p12), %vm1140_vm5, %v1190_v27 }
 0x118   : > { %1146 = vst.msk [vmem:[%s1988_s15 + $0x28] sm:$0xff] %vm1140_vm5, %v1137_v54  ;;  %v1569_v57 = vadd.f32 %v1540_v48, %v1508_v56  ;;  %v809_v58 = vpop.f32.mrb[7].mxu1 }
 0x119   : > { %1145 = vst.msk [vmem:[%s1988_s15 + $0x20] sm:$0xff] %vm1140_vm5, %v1136_v55  ;;  %v1570_v59 = vadd.f32 %v1108_v49, %v809_v58 }
 0x11a   : > { %v1139_v60 = vadd.f32 %v1569_v57, %v1398_v35 }
 0x11b   : > { %v1138_v61 = vadd.f32 %v1570_v59, %v1398_v35 }
 0x11c   : > { %1148 = vst.msk [vmem:[%s1988_s15 + $0x38] sm:$0xff] %vm1140_vm5, %v1139_v60 }
 0x11d   : > { %1147 = vst.msk [vmem:[%s1988_s15 + $0x30] sm:$0xff] %vm1140_vm5, %v1138_v61 }
 0x11f   : > { %v1185_v22 = vld [vmem:[%s1988_s15 + $0x28] sm:$0xff] }
 0x120   : > { %v1184_v19 = vld [vmem:[%s1988_s15 + $0x20] sm:$0xff]  ;;  %v1193_v30 = vsel %vm1177_vm11, %v1185_v22, 0.0 }
 0x121   : > { %v1192_v29 = vsel %vm1176_vm10, %v1184_v19, 0.0  ;;  %1201 = vst.msk [vmem:[%s1988_s15 + $0x28] sm:$0xff] %vm1140_vm5, %v1193_v30 }
 0x122   : > { %1200 = vst.msk [vmem:[%s1988_s15 + $0x20] sm:$0xff] %vm1140_vm5, %v1192_v29 }
 0x123   : > { %v1187_v3 = vld [vmem:[%s1988_s15 + $0x38] sm:$0xff] }
 0x124   : > { %v1186_v23 = vld [vmem:[%s1988_s15 + $0x30] sm:$0xff]  ;;  %v1195_v34 = vsel %vm1179_vm13, %v1187_v3, 0.0 }
 0x125   : > { %v1194_v33 = vsel %vm1178_vm12, %v1186_v23, 0.0  ;;  %1203 = vst.msk [vmem:[%s1988_s15 + $0x38] sm:$0xff] %vm1140_vm5, %v1195_v34 }
 0x126   : > { %1202 = vst.msk [vmem:[%s1988_s15 + $0x30] sm:$0xff] %vm1140_vm5, %v1194_v33 }
 0x127 PF: > { %s15_s22 = sadd.s32 1, %s1680_s22   ;;  %s2055_s18 = smov %s1672_s20 }
 0x128   : > { %p12_p13 = scmp.ge.s32.totalorder %s15_s22, 8   ;;  %s2056_s19 = smov %s1676_s21 }
 0x129   : > { %s2057_s20 = smov %s2060_s23  ;;  %s2058_s21 = smov %s2064_s24 }
 0x12a   :  { %14 = sbr.rel (!%p12_p13) target bundleno = 3 (0x3), region = 80 }

</bundles_post_ra>
